<compile_context>
chip_gen: v6e
topology: v6e:2x2x1
jax: 0.10.0
libtpu: 0.0.40
codegen_flags: <defaults>
</compile_context>

<pallas_src>
import functools

import jax
import jax.numpy as jnp
from jax.experimental import pallas as pl
from jax.experimental.pallas import tpu as pltpu


# Total f32 bytes (A + B + out) under which the whole problem is run as a single
# VMEM-resident block (no grid, no padding). Conservative for every TPU generation
# (v5e scoped-VMEM default is 16 MiB).
_SMALL_BYTES = 2 * 1024 * 1024

# Tiled-path tile caps: (256, 512) f32 A-block + (512, 256) B-block + (256, 256) out,
# all double-buffered, is ~2.5 MiB — well under default scoped VMEM on v5e/v6e/v7x.
_TM_MAX, _TN_MAX, _TK_MAX = 256, 256, 512


def _round_up(x, m):
    return ((x + m - 1) // m) * m


def _cost(M, N, K):
    return pl.CostEstimate(
        flops=2 * M * N * K,
        transcendentals=0,
        bytes_accessed=4 * (M * K + K * N + M * N),
    )


# ---------------------------------------------------------------------------
# Single-block kernels: whole problem lives in VMEM, one kernel invocation.
# ---------------------------------------------------------------------------
def _small_matmul_kernel(a_ref, b_ref, o_ref):
    o_ref[...] = jnp.dot(
        a_ref[...], b_ref[...], preferred_element_type=jnp.float32
    ).astype(o_ref.dtype)


def _small_split_matmul_kernel(a_ref, b_ref, w1_ref, w2_ref, o_ref):
    # Fused: mm(a, W[:s]) + mm(b, W[s:]) in one kernel (one output write, no XLA add).
    acc = jnp.dot(a_ref[...], w1_ref[...], preferred_element_type=jnp.float32)
    acc = acc + jnp.dot(b_ref[...], w2_ref[...], preferred_element_type=jnp.float32)
    o_ref[...] = acc.astype(o_ref.dtype)


@jax.jit
def _small_matmul(a, b):
    M, K = a.shape
    _, N = b.shape
    return pl.pallas_call(
        _small_matmul_kernel,
        out_shape=jax.ShapeDtypeStruct((M, N), jnp.float32),
        in_specs=[pl.BlockSpec(memory_space=pltpu.MemorySpace.VMEM)] * 2,
        out_specs=pl.BlockSpec(memory_space=pltpu.MemorySpace.VMEM),
        cost_estimate=_cost(M, N, K),
    )(a, b)


@jax.jit
def _small_split_matmul(a, b, w1, w2):
    M = a.shape[0]
    K = w1.shape[0] + w2.shape[0]
    N = w1.shape[1]
    return pl.pallas_call(
        _small_split_matmul_kernel,
        out_shape=jax.ShapeDtypeStruct((M, N), jnp.float32),
        in_specs=[pl.BlockSpec(memory_space=pltpu.MemorySpace.VMEM)] * 4,
        out_specs=pl.BlockSpec(memory_space=pltpu.MemorySpace.VMEM),
        cost_estimate=_cost(M, N, K),
    )(a, b, w1, w2)


# ---------------------------------------------------------------------------
# Tiled kernel for large problems. The output block is resident across the k
# axis (its index_map ignores k), so we accumulate directly into the f32
# output block — no extra VMEM scratch, no final acc->out copy.
# ---------------------------------------------------------------------------
def _tiled_matmul_kernel(a_ref, b_ref, o_ref):
    @pl.when(pl.program_id(2) == 0)
    def _():
        o_ref[...] = jnp.zeros_like(o_ref)

    o_ref[...] += jnp.dot(
        a_ref[...], b_ref[...], preferred_element_type=jnp.float32
    )


@functools.partial(jax.jit, static_argnames=("tm", "tn", "tk"))
def _tiled_matmul(a, b, *, tm, tn, tk):
    M, K = a.shape
    _, N = b.shape
    Mp, Kp, Np = _round_up(M, tm), _round_up(K, tk), _round_up(N, tn)

    # Pad only when shapes are not already tile multiples (K-padding with zeros
    # is required for correctness of the reduction; M/N padding only for layout).
    a_p = a if (Mp == M and Kp == K) else jnp.zeros((Mp, Kp), a.dtype).at[:M, :K].set(a)
    b_p = b if (Kp == K and Np == N) else jnp.zeros((Kp, Np), b.dtype).at[:K, :N].set(b)

    out_p = pl.pallas_call(
        _tiled_matmul_kernel,
        out_shape=jax.ShapeDtypeStruct((Mp, Np), jnp.float32),
        grid_spec=pltpu.PrefetchScalarGridSpec(
            num_scalar_prefetch=0,
            grid=(Mp // tm, Np // tn, Kp // tk),
            in_specs=[
                pl.BlockSpec((tm, tk), lambda i, j, k: (i, k)),
                pl.BlockSpec((tk, tn), lambda i, j, k: (k, j)),
            ],
            out_specs=pl.BlockSpec((tm, tn), lambda i, j, k: (i, j)),
        ),
        compiler_params=pltpu.CompilerParams(
            dimension_semantics=("parallel", "parallel", "arbitrary")
        ),
        cost_estimate=_cost(M, N, K),
    )(a_p, b_p)

    if Mp != M or Np != N:
        out_p = out_p[:M, :N]
    return out_p


def pallas_matmul(a, b):
    """a @ b in float32 via Pallas TPU (single-block fast path or tiled MXU matmul)."""
    M, K = a.shape
    K2, N = b.shape
    assert K == K2
    if 4 * (M * K + K * N + M * N) <= _SMALL_BYTES:
        return _small_matmul(a, b)
    # Tiles clamped to the problem so tiny dims don't get padded to 256/512.
    tm = min(_TM_MAX, _round_up(M, 8))
    tn = min(_TN_MAX, _round_up(N, 128))
    tk = min(_TK_MAX, _round_up(K, 128))
    return _tiled_matmul(a, b, tm=tm, tn=tn, tk=tk)


class Layer:
    """JAX/Pallas port of the PyTorch `Layer` module (bias-free linear)."""

    def __init__(self, input_dim, output_dim, key=None, weights=None):
        if weights is None:
            # W ~ N(0, 1) / sqrt(input_dim), same as torch.randn(...)/np.sqrt(input_dim)
            self.W = (
                jax.random.normal(key, (input_dim, output_dim), dtype=jnp.float32)
                / jnp.sqrt(jnp.float32(input_dim))
            )
        else:
            W = jnp.asarray(weights, dtype=jnp.float32)
            assert W.shape == (input_dim, output_dim)
            self.W = W

    def __call__(self, data, split=False):
        if split:
            a, b = data
            s = a.shape[1]
            M, (K, N) = a.shape[0], self.W.shape
            if 4 * (M * K + K * N + M * N) <= _SMALL_BYTES:
                # Fused single kernel: mm(a, W[:s]) + mm(b, W[s:]).
                return _small_split_matmul(a, b, self.W[:s, :], self.W[s:, :])
            # Large path: mm(a, W[:s]) + mm(b, W[s:]) == mm(concat([a, b], 1), W),
            # so one tiled kernel instead of two matmuls + an add.
            return pallas_matmul(jnp.concatenate([a, b], axis=1), self.W)
        return pallas_matmul(data, self.W)


if __name__ == "__main__":
    key = jax.random.PRNGKey(0)
    k_w, k_x, k_a, k_b, k_ba, k_bb = jax.random.split(key, 6)

    input_dim, output_dim, batch = 32, 16, 8
    layer = Layer(input_dim, output_dim, key=k_w)

    # Default path: torch.mm(data, W)  -> single-block fast path.
    x = jax.random.normal(k_x, (batch, input_dim), dtype=jnp.float32)
    y = layer(x)
    jax.block_until_ready(y)

    # Split path: mm(a, W[:s]) + mm(b, W[s:]) -> one fused kernel.
    s = 20
    a = jax.random.normal(k_a, (batch, s), dtype=jnp.float32)
    b = jax.random.normal(k_b, (batch, input_dim - s), dtype=jnp.float32)
    y_split = layer((a, b), split=True)
    jax.block_until_ready(y_split)

    # Reference checks against plain JAX.
    ref = x @ layer.W
    ref_split = a @ layer.W[:s, :] + b @ layer.W[s:, :]
    assert y.shape == (batch, output_dim)
    assert jnp.allclose(y, ref, atol=1e-5), float(jnp.max(jnp.abs(y - ref)))
    assert jnp.allclose(y_split, ref_split, atol=1e-5), float(
        jnp.max(jnp.abs(y_split - ref_split))
    )

    # Also exercise the tiled (large) path to verify the K-reduction grid.
    big_M, big_K, big_N = 256, 2048, 256
    xa = jax.random.normal(k_ba, (big_M, big_K), dtype=jnp.float32)
    xb = jax.random.normal(k_bb, (big_K, big_N), dtype=jnp.float32)
    y_big = pallas_matmul(xa, xb)
    jax.block_until_ready(y_big)
    ref_big = jnp.dot(xa, xb, precision=jax.lax.Precision.HIGHEST)
    rel_err = float(jnp.max(jnp.abs(y_big - ref_big)) / jnp.max(jnp.abs(ref_big)))
    assert rel_err < 1e-2, rel_err

    print("KERNEL_OK")
</pallas_src>

<mosaic_0001>
module attributes {stable_mosaic.version = 11 : i64} {
  func.func @_small_matmul_kernel(%arg0: memref<8x32xf32, #tpu.memory_space<vmem>>, %arg1: memref<32x16xf32, #tpu.memory_space<vmem>>, %arg2: memref<8x16xf32, #tpu.memory_space<vmem>>) attributes {dimension_semantics = [], scalar_prefetch = 0 : i64, scratch_operands = 0 : i64, tpu.core_type = #tpu.core_type<tc>} {
    %c0 = arith.constant 0 : index
    %c0_0 = arith.constant 0 : index
    %0 = vector.load %arg0[%c0, %c0_0] : memref<8x32xf32, #tpu.memory_space<vmem>>, vector<8x32xf32>
    %c0_1 = arith.constant 0 : index
    %c0_2 = arith.constant 0 : index
    %1 = vector.load %arg1[%c0_1, %c0_2] : memref<32x16xf32, #tpu.memory_space<vmem>>, vector<32x16xf32>
    %cst = arith.constant dense<0.000000e+00> : vector<8x16xf32>
    %2 = tpu.matmul %0, %1, %cst {dimension_numbers = #tpu.dot_dimension_numbers<[1], [0], [0], [1], [0, 0, 1, 1], [], []>} : vector<8x32xf32>, vector<32x16xf32>, vector<8x16xf32> -> vector<8x16xf32>
    %c0_3 = arith.constant 0 : index
    %c0_4 = arith.constant 0 : index
    %3 = vector.load %arg2[%c0_3, %c0_4] : memref<8x16xf32, #tpu.memory_space<vmem>>, vector<8x16xf32>
    tpu.vector_store %arg2[%c0_3, %c0_4], %2 {strides = array<i32>} : memref<8x16xf32, #tpu.memory_space<vmem>>, vector<8x16xf32>,
    return
  }
}

</mosaic_0001>

<bundles_post_ra>
// kernel: _small_matmul.1
= control target key start
LH: loop header
LB: loop body
LE: loop exit
PB: predicated region body
PF: predicated region fallthrough
CT: control target
= control target key end

     0   :  { %v149_v1 = vmov 0.0   ;;  %vm150_vm0 = vmmov 0   ;;  %s185_s0 = inlined_call_operand.vmem [shape: f32[8,32], index: 0, kind: input, shape index: {}]   ;;  %s186_s1 = inlined_call_operand.vmem [shape: f32[32,16], index: 1, kind: input, shape index: {}]   ;;  %s187_s2 = inlined_call_operand.hbm [shape: f32[8,16], index: 2, kind: output, shape index: {}]  }
   0x1   :  { %v16_v0 = vld [vmem:[%s186_s1 + $0x18] sm:$0xff]  ;;  %113 = vmatprep.subr.mxu0 %v149_v1  ;;  %v15_v2 = vld [vmem:[%s186_s1 + $0x10] sm:$0xff]  ;;  %121 = vmatprep.mubr.msk.f32.mxu0 %vm150_vm0, %v149_v1 }
   0x2   :  { %7 = vsyncpa [#allocation3], 0  ;;  %114 = vmatpush3.msra.mxu0 %v16_v0  ;;  %v14_v3 = vld [vmem:[%s186_s1 + $0x8] sm:$0xff]  ;;  %v13_v4 = vld [vmem:[%s186_s1] sm:$0xff]  ;;  %vm17_vm1 = vcmask 261120   ;;  %s151_s19 = smov [#allocation2]  }
   0x3   :  { %115 = vmatprep.subr.mxu0 %v149_v1  ;;  %v12_v5 = vld [vmem:[%s185_s0] sm:$0xff]  ;;  %s99_s20 = sshll.u32 %s151_s19, 4  ;;  %vm91_vm2 = vcmask 130048   ;;  %s100_s20 = int_to_ptr.vmem [resolvable:$true] %s99_s20 }
   0x4   :  { %116 = vmatpush3.msra.mxu0 %v15_v2  ;;  %s127_s21 = scalar_lea.vmem %s100_s20, 128  ;;  %p132_p1 = scmp.lt.s32.totalorder %s100_s20, %s100_s20 }
   0x5   :  { %117 = vmatprep.subr.mxu0 %v149_v1  ;;  %p128_p0 = scmp.ne.s32.totalorder %s100_s20, %s127_s21  ;;  %p133_p2 = scmp.lt.s32.totalorder %s127_s21, %s127_s21 }
   0x6   :  { %118 = vmatpush3.msra.mxu0 %v14_v3 }
   0x7   :  { %119 = vmatprep.subr.mxu0 %v149_v1  ;;  %p134_p3 = por %p133_p2, %p132_p1 }
   0x8   :  { %120 = vmatpush3.msra.mxu0 %v13_v4 }
   0x9   :  { %122 = vmatmul.mubr.msk.f32.vlgmr.msra.gmra.mxu0 %vm17_vm1, %v12_v5  ;;  %p135_p4 = pnand %p134_p3, %p128_p0 }
  0xc9   :  { %v87_v6 = vpop.f32.mrf.mxu0 }
  0xca   :  { %92 = vst.msk [vmem:[#allocation2] sm:$0xff] %vm91_vm2, %v87_v6 }
  0xcb   :  { %v123_v7 = vpop.f32.mrf.mxu0 }
  0xcc   :  { %138 = shalt.err (!%p135_p4)
}
  0xcd   :  { %102 = dma.vmem_to_hbm [thread:$0]  %s100_s20, 128, %s187_s2, [#allocation3]  }
  0xce   :  { %147 = dma.done.wait [#allocation3], 128  }
  0xcf   :  { %148 = vsyncadd [#allocation3], 4294967168 }
  0xd0   :  { %106 = vsyncpa [#allocation3], 1 }

</bundles_post_ra>
